<compile_context>
chip_gen: v7x
topology: tpu7x:2x2x1
jax: 0.10.0
libtpu: 0.0.40
codegen_flags: <defaults>
</compile_context>

<pallas_src>
import functools

import jax
import jax.numpy as jnp
from jax.experimental import pallas as pl
from jax.experimental.pallas import tpu as pltpu

LANE = 128
SUBLANE = 8


def _round_up(x, m):
    return ((x + m - 1) // m) * m


def classify_kernel(x_ref, w1_ref, b1_ref, w2_ref, b2_ref, w3_ref, b3_ref, o_ref):
    # first_function + ReLU (dropout: eval-mode identity).
    # bf16 operands on the MXU, f32 accumulation.
    x = x_ref[...].astype(jnp.bfloat16)
    h1 = jnp.dot(x, w1_ref[...], preferred_element_type=jnp.float32)
    h1 = jnp.maximum(h1 + b1_ref[...], 0.0)

    # second_function + ReLU — output padded to 128 lanes (zero cols in w2/b2,
    # so the padded h2 columns are exactly 0 after ReLU).
    h2 = jnp.dot(h1.astype(jnp.bfloat16), w2_ref[...],
                 preferred_element_type=jnp.float32)
    h2 = jnp.maximum(h2 + b2_ref[...], 0.0)

    # third_function — class dim padded to 128 lanes; padded w3 rows are zero
    # and padded bias columns hold -1e30 so the padded logits vanish under exp.
    logits = jnp.dot(h2.astype(jnp.bfloat16), w3_ref[...],
                     preferred_element_type=jnp.float32) + b3_ref[...]

    # LogSoftmax over dim=1 (classes), numerically stable. The row max always
    # comes from a real finite column, so exp(-1e30 - m) underflows cleanly to 0.
    m = jnp.max(logits, axis=1, keepdims=True)
    shifted = logits - m
    lse = jnp.log(jnp.sum(jnp.exp(shifted), axis=1, keepdims=True))
    o_ref[...] = (shifted - lse).astype(o_ref.dtype)


def prepare_params(params):
    """One-time weight preparation, hoisted out of the forward path.

    Returns (w1_bf16, b1, w2_padded_bf16, b2_padded, w3_padded_bf16, b3_padded)
    with the middle hidden dim padded 32->128 and the class dim padded to a
    lane-dense multiple of 128."""
    w1, b1, w2, b2, w3, b3 = params
    H2 = w2.shape[1]
    C = w3.shape[1]
    H2_pad = _round_up(H2, LANE)
    C_pad = _round_up(max(C, 1), LANE)

    w1_bf = w1.astype(jnp.bfloat16)
    w2_p = (jnp.zeros((w2.shape[0], H2_pad), jnp.float32)
            .at[:, :H2].set(w2).astype(jnp.bfloat16))
    b2_p = jnp.zeros((1, H2_pad), jnp.float32).at[:, :H2].set(b2)
    w3_p = (jnp.zeros((H2_pad, C_pad), jnp.float32)
            .at[:H2, :C].set(w3).astype(jnp.bfloat16))
    # -1e30 (not -inf) in padded bias columns: avoids (-inf)-(-inf) NaNs while
    # still underflowing to 0 in the softmax denominator.
    b3_p = jnp.full((1, C_pad), -1e30, jnp.float32).at[:, :C].set(b3)
    return (w1_bf, b1, w2_p, b2_p, w3_p, b3_p)


@functools.partial(jax.jit, static_argnames=("num_classes", "tile_b", "out_dtype"))
def classify_forward(x, prepped, num_classes, tile_b=1024, out_dtype=jnp.float32):
    """x: (B, 768) pooled phobert output (f32 or bf16).
    prepped: output of prepare_params. Returns (B, num_classes) log-probs."""
    w1_bf, b1, w2_p, b2_p, w3_p, b3_p = prepped
    B, H = x.shape
    C_pad = w3_p.shape[1]

    # Batch tiling: weights are DMA'd once (constant index_map) and stay
    # VMEM-resident; x/out tiles double-buffer behind compute. The last block
    # may be partial (masked loads/stores) — no jnp.pad copy of x is made.
    tb = min(tile_b, _round_up(B, SUBLANE))
    grid = (pl.cdiv(B, tb),)

    const = lambda i: (0, 0)
    out = pl.pallas_call(
        classify_kernel,
        out_shape=jax.ShapeDtypeStruct((B, C_pad), out_dtype),
        grid=grid,
        in_specs=[
            pl.BlockSpec((tb, H), lambda i: (i, 0)),   # x tile
            pl.BlockSpec(w1_bf.shape, const),          # resident weights/biases
            pl.BlockSpec(b1.shape, const),
            pl.BlockSpec(w2_p.shape, const),
            pl.BlockSpec(b2_p.shape, const),
            pl.BlockSpec(w3_p.shape, const),
            pl.BlockSpec(b3_p.shape, const),
        ],
        out_specs=pl.BlockSpec((tb, C_pad), lambda i: (i, 0)),
        compiler_params=pltpu.CompilerParams(
            # On v7x, use pltpu.CORE_PARALLEL here if xprof shows one TC.
            dimension_semantics=("parallel",),
            vmem_limit_bytes=32 * 1024 * 1024,
        ),
    )(x, w1_bf, b1, w2_p, b2_p, w3_p, b3_p)
    return out[:, :num_classes]


def init_params(key, number_of_category):
    """Deterministic init matching nn.Linear default (uniform +-1/sqrt(fan_in)).

    Weights are stored as (in_features, out_features); biases as (1, out)."""
    dims = [(768, 512), (512, 32), (32, number_of_category)]
    params = []
    for (fin, fout) in dims:
        key, kw, kb = jax.random.split(key, 3)
        bound = 1.0 / (fin ** 0.5)
        w = jax.random.uniform(kw, (fin, fout), jnp.float32, -bound, bound)
        b = jax.random.uniform(kb, (1, fout), jnp.float32, -bound, bound)
        params += [w, b]
    return tuple(params)


def reference_forward(x, params):
    """Matched-precision reference: bf16 operands into all three matmuls with
    f32 accumulation (mirrors the kernel's numerics), f32 everywhere else.
    Against the pure-f32 PyTorch module expect ~1e-2-level logit differences."""
    w1, b1, w2, b2, w3, b3 = params
    h1 = jnp.dot(x.astype(jnp.bfloat16), w1.astype(jnp.bfloat16),
                 preferred_element_type=jnp.float32)
    h1 = jnp.maximum(h1 + b1, 0.0)
    h2 = jnp.dot(h1.astype(jnp.bfloat16), w2.astype(jnp.bfloat16),
                 preferred_element_type=jnp.float32)
    h2 = jnp.maximum(h2 + b2, 0.0)
    logits = jnp.dot(h2.astype(jnp.bfloat16), w3.astype(jnp.bfloat16),
                     preferred_element_type=jnp.float32) + b3
    return jax.nn.log_softmax(logits, axis=1)


if __name__ == "__main__":
    key = jax.random.PRNGKey(0)
    key, kx = jax.random.split(key)

    B = 8                     # batch
    HIDDEN = 768              # phobert pooled-output width
    NUM_CATEGORIES = 10

    # Synthetic "pooled phobert output" (stand-in for phobert(input)[1]).
    x = jax.random.normal(kx, (B, HIDDEN), jnp.float32)
    params = init_params(key, NUM_CATEGORIES)

    prepped = prepare_params(params)            # one-time weight prep
    prepped = jax.block_until_ready(prepped)

    out = classify_forward(x, prepped, num_classes=NUM_CATEGORIES)
    out = jax.block_until_ready(out)

    ref = reference_forward(x, params)
    assert out.shape == (B, NUM_CATEGORIES)
    assert jnp.allclose(out, ref, atol=2e-3, rtol=2e-3), float(
        jnp.max(jnp.abs(out - ref)))

    print("KERNEL_OK")
</pallas_src>

<mosaic_0001>
module attributes {stable_mosaic.version = 11 : i64} {
  func.func @classify_kernel(%arg0: i32, %arg1: memref<8x768xf32, #tpu.memory_space<vmem>>, %arg2: memref<768x512xbf16, #tpu.memory_space<vmem>>, %arg3: memref<1x512xf32, #tpu.memory_space<vmem>>, %arg4: memref<512x128xbf16, #tpu.memory_space<vmem>>, %arg5: memref<1x128xf32, #tpu.memory_space<vmem>>, %arg6: memref<128x128xbf16, #tpu.memory_space<vmem>>, %arg7: memref<1x128xf32, #tpu.memory_space<vmem>>, %arg8: memref<8x128xf32, #tpu.memory_space<vmem>>) attributes {dimension_semantics = [#tpu.dimension_semantics<parallel>], iteration_bounds = array<i64: 1>, scalar_prefetch = 0 : i64, scratch_operands = 0 : i64, tpu.core_type = #tpu.core_type<tc>, window_params = [{transform_indices = @transform_0, window_bounds = array<i64: 8, 768>}, {pipeline_mode = #tpu.pipeline_mode<synchronous>, transform_indices = @transform_1, window_bounds = array<i64: 768, 512>}, {pipeline_mode = #tpu.pipeline_mode<synchronous>, transform_indices = @transform_2, window_bounds = array<i64: 1, 512>}, {pipeline_mode = #tpu.pipeline_mode<synchronous>, transform_indices = @transform_3, window_bounds = array<i64: 512, 128>}, {pipeline_mode = #tpu.pipeline_mode<synchronous>, transform_indices = @transform_4, window_bounds = array<i64: 1, 128>}, {pipeline_mode = #tpu.pipeline_mode<synchronous>, transform_indices = @transform_5, window_bounds = array<i64: 128, 128>}, {pipeline_mode = #tpu.pipeline_mode<synchronous>, transform_indices = @transform_6, window_bounds = array<i64: 1, 128>}, {transform_indices = @transform_7, window_bounds = array<i64: 8, 128>}]} {
    %c0 = arith.constant 0 : index
    %c0_0 = arith.constant 0 : index
    %0 = vector.load %arg1[%c0, %c0_0] : memref<8x768xf32, #tpu.memory_space<vmem>>, vector<8x768xf32>
    %1 = arith.truncf %0 : vector<8x768xf32> to vector<8x768xbf16>
    %c0_1 = arith.constant 0 : index
    %c0_2 = arith.constant 0 : index
    %2 = vector.load %arg2[%c0_1, %c0_2] : memref<768x512xbf16, #tpu.memory_space<vmem>>, vector<768x512xbf16>
    %cst = arith.constant dense<0.000000e+00> : vector<8x512xf32>
    %3 = tpu.matmul %1, %2, %cst {dimension_numbers = #tpu.dot_dimension_numbers<[1], [0], [0], [1], [0, 0, 1, 1], [], []>} : vector<8x768xbf16>, vector<768x512xbf16>, vector<8x512xf32> -> vector<8x512xf32>
    %c0_3 = arith.constant 0 : index
    %c0_4 = arith.constant 0 : index
    %4 = vector.load %arg3[%c0_3, %c0_4] : memref<1x512xf32, #tpu.memory_space<vmem>>, vector<1x512xf32>
    %5 = vector.broadcast %4 : vector<1x512xf32> to vector<8x512xf32>
    %6 = arith.addf %3, %5 : vector<8x512xf32>
    %cst_5 = arith.constant 0.000000e+00 : f32
    %7 = vector.broadcast %cst_5 : f32 to vector<8x512xf32>
    %8 = arith.maximumf %6, %7 : vector<8x512xf32>
    %9 = arith.truncf %8 : vector<8x512xf32> to vector<8x512xbf16>
    %c0_6 = arith.constant 0 : index
    %c0_7 = arith.constant 0 : index
    %10 = vector.load %arg4[%c0_6, %c0_7] : memref<512x128xbf16, #tpu.memory_space<vmem>>, vector<512x128xbf16>
    %cst_8 = arith.constant dense<0.000000e+00> : vector<8x128xf32>
    %11 = tpu.matmul %9, %10, %cst_8 {dimension_numbers = #tpu.dot_dimension_numbers<[1], [0], [0], [1], [0, 0, 1, 1], [], []>} : vector<8x512xbf16>, vector<512x128xbf16>, vector<8x128xf32> -> vector<8x128xf32>
    %c0_9 = arith.constant 0 : index
    %c0_10 = arith.constant 0 : index
    %12 = vector.load %arg5[%c0_9, %c0_10] : memref<1x128xf32, #tpu.memory_space<vmem>>, vector<1x128xf32>
    %13 = vector.broadcast %12 : vector<1x128xf32> to vector<8x128xf32>
    %14 = arith.addf %11, %13 : vector<8x128xf32>
    %cst_11 = arith.constant 0.000000e+00 : f32
    %15 = vector.broadcast %cst_11 : f32 to vector<8x128xf32>
    %16 = arith.maximumf %14, %15 : vector<8x128xf32>
    %17 = arith.truncf %16 : vector<8x128xf32> to vector<8x128xbf16>
    %c0_12 = arith.constant 0 : index
    %c0_13 = arith.constant 0 : index
    %18 = vector.load %arg6[%c0_12, %c0_13] : memref<128x128xbf16, #tpu.memory_space<vmem>>, vector<128x128xbf16>
    %cst_14 = arith.constant dense<0.000000e+00> : vector<8x128xf32>
    %19 = tpu.matmul %17, %18, %cst_14 {dimension_numbers = #tpu.dot_dimension_numbers<[1], [0], [0], [1], [0, 0, 1, 1], [], []>} : vector<8x128xbf16>, vector<128x128xbf16>, vector<8x128xf32> -> vector<8x128xf32>
    %c0_15 = arith.constant 0 : index
    %c0_16 = arith.constant 0 : index
    %20 = vector.load %arg7[%c0_15, %c0_16] : memref<1x128xf32, #tpu.memory_space<vmem>>, vector<1x128xf32>
    %21 = vector.broadcast %20 : vector<1x128xf32> to vector<8x128xf32>
    %22 = arith.addf %19, %21 : vector<8x128xf32>
    %cst_17 = arith.constant dense<0xFF800000> : vector<8xf32>
    %23 = vector.multi_reduction <maximumf>, %22, %cst_17 [1] : vector<8x128xf32> to vector<8xf32>
    %24 = vector.shape_cast %23 : vector<8xf32> to vector<8x1xf32>
    %25 = vector.broadcast %24 : vector<8x1xf32> to vector<8x128xf32>
    %26 = arith.subf %22, %25 : vector<8x128xf32>
    %27 = math.exp %26 : vector<8x128xf32>
    %cst_18 = arith.constant dense<0.000000e+00> : vector<8xf32>
    %28 = vector.multi_reduction <add>, %27, %cst_18 [1] : vector<8x128xf32> to vector<8xf32>
    %29 = vector.shape_cast %28 : vector<8xf32> to vector<8x1xf32>
    %30 = math.log %29 : vector<8x1xf32>
    %31 = vector.broadcast %30 : vector<8x1xf32> to vector<8x128xf32>
    %32 = arith.subf %26, %31 : vector<8x128xf32>
    %c0_19 = arith.constant 0 : index
    %c0_20 = arith.constant 0 : index
    %33 = vector.load %arg8[%c0_19, %c0_20] : memref<8x128xf32, #tpu.memory_space<vmem>>, vector<8x128xf32>
    tpu.vector_store %arg8[%c0_19, %c0_20], %32 {strides = array<i32>} : memref<8x128xf32, #tpu.memory_space<vmem>>, vector<8x128xf32>,
    return
  }
  func.func @transform_0(%arg0: i32) -> (i32, i32) {
    %c0_i32 = arith.constant 0 : i32
    %c0_i32_0 = arith.constant 0 : i32
    return %arg0, %c0_i32 : i32, i32
  }
  func.func @transform_1(%arg0: i32) -> (i32, i32) {
    %c0_i32 = arith.constant 0 : i32
    %c0_i32_0 = arith.constant 0 : i32
    %c0_i32_1 = arith.constant 0 : i32
    return %c0_i32, %c0_i32_0 : i32, i32
  }
  func.func @transform_2(%arg0: i32) -> (i32, i32) {
    %c0_i32 = arith.constant 0 : i32
    %c0_i32_0 = arith.constant 0 : i32
    %c0_i32_1 = arith.constant 0 : i32
    return %c0_i32, %c0_i32_0 : i32, i32
  }
  func.func @transform_3(%arg0: i32) -> (i32, i32) {
    %c0_i32 = arith.constant 0 : i32
    %c0_i32_0 = arith.constant 0 : i32
    %c0_i32_1 = arith.constant 0 : i32
    return %c0_i32, %c0_i32_0 : i32, i32
  }
  func.func @transform_4(%arg0: i32) -> (i32, i32) {
    %c0_i32 = arith.constant 0 : i32
    %c0_i32_0 = arith.constant 0 : i32
    %c0_i32_1 = arith.constant 0 : i32
    return %c0_i32, %c0_i32_0 : i32, i32
  }
  func.func @transform_5(%arg0: i32) -> (i32, i32) {
    %c0_i32 = arith.constant 0 : i32
    %c0_i32_0 = arith.constant 0 : i32
    %c0_i32_1 = arith.constant 0 : i32
    return %c0_i32, %c0_i32_0 : i32, i32
  }
  func.func @transform_6(%arg0: i32) -> (i32, i32) {
    %c0_i32 = arith.constant 0 : i32
    %c0_i32_0 = arith.constant 0 : i32
    %c0_i32_1 = arith.constant 0 : i32
    return %c0_i32, %c0_i32_0 : i32, i32
  }
  func.func @transform_7(%arg0: i32) -> (i32, i32) {
    %c0_i32 = arith.constant 0 : i32
    %c0_i32_0 = arith.constant 0 : i32
    return %arg0, %c0_i32 : i32, i32
  }
}

</mosaic_0001>

<bundles_post_ra>
// kernel: classify_forward.1
= control target key start
LH: loop header
LB: loop body
LE: loop exit
PB: predicated region body
PF: predicated region fallthrough
CT: control target
= control target key end

     0   :  { %12 = vsyncpa [#allocation3], 0  ;;  %s2913_s0 = inlined_call_operand.hbm [shape: f32[8,768], index: 0, kind: input, shape index: {}]   ;;  %s2914_s1 = inlined_call_operand.hbm [shape: bf16[768,512], index: 1, kind: input, shape index: {}]   ;;  %s2915_s2 = inlined_call_operand.vmem [shape: f32[1,512], index: 2, kind: input, shape index: {}]   ;;  %s2916_s3 = inlined_call_operand.hbm [shape: bf16[512,128], index: 3, kind: input, shape index: {}]   ;;  %s2917_s4 = inlined_call_operand.vmem [shape: f32[1,128], index: 4, kind: input, shape index: {}]   ;;  %s2918_s5 = inlined_call_operand.hbm [shape: bf16[128,128], index: 5, kind: input, shape index: {}]   ;;  %s2919_s6 = inlined_call_operand.vmem [shape: f32[1,128], index: 6, kind: input, shape index: {}]   ;;  %s2920_s7 = inlined_call_operand.hbm [shape: f32[8,128], index: 7, kind: output, shape index: {}]  }
   0x1   :  { %13 = vsyncpa [#allocation6], 0 }
   0x2   :  { %14 = vsyncpa [#allocation9], 0 }
   0x3   :  { %15 = vsyncpa [#allocation4], 0  ;;  %s2793_s24 = smov [#allocation5]   ;;  %s2675_s28 = scalar_lea.hbm %s2914_s1, 24576 }
   0x4   :  { %s31_s25 = sshll.u32 %s2793_s24, 4  ;;  %p2676_p0 = scmp.ne.s32.totalorder %s2914_s1, %s2675_s28  ;;  %s32_s25 = int_to_ptr.vmem [resolvable:$true] %s31_s25 }
   0x5   :  { %p2679_p1 = scmp.lt.u32.totalorder %s2675_s28, %s2914_s1 }
   0x7   :  { %p2681_p2 = pnand %p2679_p1, %p2676_p0 }
   0x9   :  { %2684 = shalt.err (!%p2681_p2)
}
   0xa   :  { %s2685_s10 = scalar_lea.vmem %s32_s25, 24576  ;;  %p2690_p4 = scmp.lt.s32.totalorder %s32_s25, %s32_s25 }
   0xb   :  { %p2686_p3 = scmp.ne.s32.totalorder %s32_s25, %s2685_s10  ;;  %p2691_p5 = scmp.lt.s32.totalorder %s2685_s10, %s2685_s10 }
   0xd   :  { %p2692_p6 = por %p2691_p5, %p2690_p4 }
   0xf   :  { %p2693_p7 = pnand %p2692_p6, %p2686_p3 }
  0x11   :  { %2696 = shalt.err (!%p2693_p7)
}
  0x12   :  { %s2794_s11 = smov 256   ;;  %s2795_s12 = smov 16  }
  0x13   :  { %37 = dma.hbm_to_vmem [thread:$0]  %s2914_s1, 24576, %s32_s25, [#allocation6], %s2794_s11, %s2794_s11, %s2795_s12  }
  0x14   :  { %s2796_s15 = smov [#allocation2]   ;;  %s2797_s17 = smov [#allocation7]  }
  0x15   :  { %s22_s16 = sshll.u32 %s2796_s15, 4  ;;  %s45_s18 = sshll.u32 %s2797_s17, 4  ;;  %s23_s16 = int_to_ptr.vmem [resolvable:$true] %s22_s16  ;;  %s46_s18 = int_to_ptr.vmem [resolvable:$true] %s45_s18 }
  0x16   :  { %s2697_s21 = scalar_lea.hbm %s2913_s0, 768 }
  0x17   :  { %p2698_p8 = scmp.ne.s32.totalorder %s2913_s0, %s2697_s21  ;;  %p2701_p9 = scmp.lt.u32.totalorder %s2697_s21, %s2913_s0 }
  0x19   :  { %p2703_p10 = pnand %p2701_p9, %p2698_p8 }
  0x1b   :  { %2706 = shalt.err (!%p2703_p10)
}
  0x1c   :  { %s2707_s1 = scalar_lea.vmem %s23_s16, 768  ;;  %p2712_p12 = scmp.lt.s32.totalorder %s23_s16, %s23_s16 }
  0x1d   :  { %p2708_p11 = scmp.ne.s32.totalorder %s23_s16, %s2707_s1  ;;  %p2713_p13 = scmp.lt.s32.totalorder %s2707_s1, %s2707_s1 }
  0x1f   :  { %p2714_p0 = por %p2713_p13, %p2712_p12 }
  0x21   :  { %p2715_p1 = pnand %p2714_p0, %p2708_p11 }
  0x23   :  { %2718 = shalt.err (!%p2715_p1)
}
  0x24   :  { %25 = dma.hbm_to_vmem [thread:$0]  %s2913_s0, 768, %s23_s16, [#allocation3]  }
  0x25   :  { %s2719_s30 = scalar_lea.hbm %s2916_s3, 4096 }
  0x26   :  { %p2720_p2 = scmp.ne.s32.totalorder %s2916_s3, %s2719_s30  ;;  %p2723_p3 = scmp.lt.u32.totalorder %s2719_s30, %s2916_s3 }
  0x28   :  { %p2725_p4 = pnand %p2723_p3, %p2720_p2 }
  0x2a   :  { %2728 = shalt.err (!%p2725_p4)
}
  0x2b   :  { %s2729_s12 = scalar_lea.vmem %s46_s18, 4096  ;;  %p2734_p6 = scmp.lt.s32.totalorder %s46_s18, %s46_s18 }
  0x2c   :  { %p2730_p5 = scmp.ne.s32.totalorder %s46_s18, %s2729_s12  ;;  %p2735_p7 = scmp.lt.s32.totalorder %s2729_s12, %s2729_s12 }
  0x2e   :  { %p2736_p8 = por %p2735_p7, %p2734_p6 }
  0x30   :  { %p2737_p9 = pnand %p2736_p8, %p2730_p5 }
  0x32   :  { %2740 = shalt.err (!%p2737_p9)
}
  0x33   :  { %s2798_s0 = smov 64   ;;  %s2799_s13 = smov 4  }
  0x34   :  { %51 = dma.hbm_to_vmem [thread:$0]  %s2916_s3, 4096, %s46_s18, [#allocation6], %s2798_s0, %s2798_s0, %s2799_s13  }
  0x35   :  { %s2800_s16 = smov [#allocation8]   ;;  %s2741_s21 = scalar_lea.hbm %s2918_s5, 1024 }
  0x36   :  { %s59_s17 = sshll.u32 %s2800_s16, 4  ;;  %p2742_p10 = scmp.ne.s32.totalorder %s2918_s5, %s2741_s21  ;;  %s60_s17 = int_to_ptr.vmem [resolvable:$true] %s59_s17 }
  0x37   :  { %p2745_p11 = scmp.lt.u32.totalorder %s2741_s21, %s2918_s5 }
  0x39   :  { %p2747_p12 = pnand %p2745_p11, %p2742_p10 }
  0x3b   :  { %2750 = shalt.err (!%p2747_p12)
}
  0x3c   :  { %s2751_s1 = scalar_lea.vmem %s60_s17, 1024  ;;  %p2756_p0 = scmp.lt.s32.totalorder %s60_s17, %s60_s17 }
  0x3d   :  { %p2752_p13 = scmp.ne.s32.totalorder %s60_s17, %s2751_s1  ;;  %p2757_p1 = scmp.lt.s32.totalorder %s2751_s1, %s2751_s1 }
  0x3f   :  { %p2758_p2 = por %p2757_p1, %p2756_p0 }
  0x41   :  { %p2759_p3 = pnand %p2758_p2, %p2752_p13 }
  0x43   :  { %2762 = shalt.err (!%p2759_p3)
}
  0x44   :  { %65 = dma.hbm_to_vmem [thread:$0]  %s2918_s5, 1024, %s60_s17, [#allocation9], %s2798_s0, %s2798_s0, %s2799_s13  }
  0x45   :  { %2785 = dma.done.wait [#allocation3], 768  }
  0x46   :  { %2786 = vsyncadd [#allocation3], 4294966528 }
  0x47   :  { %2787 = dma.done.wait [#allocation6], 28672  }
  0x48   :  { %2788 = vsyncadd [#allocation6], 4294938624 }
  0x49   :  { %2789 = dma.done.wait [#allocation9], 1024  }
  0x4a   :  { %2790 = vsyncadd [#allocation9], 4294966272  ;;  %v2343_v0 = vld [vmem:[#allocation5 + $0x4] ss:$16 sps:$4 sm:$0xff]   ;;  %v2345_v1 = vld [vmem:[#allocation5 + $0xc] ss:$16 sps:$4 sm:$0xff]  }
  0x4b   :  { %1267 = vmatprep.subr.bf16.mxu0 %v2343_v0  ;;  %v2347_v2 = vld [vmem:[#allocation5] ss:$16 sps:$4 sm:$0xff]   ;;  %v2348_v3 = vld [vmem:[#allocation5 + $0x8] ss:$16 sps:$4 sm:$0xff]   ;;  %1390 = vmatprep.subr.bf16.mxu1 %v2345_v1  ;;  %v2349_v4 = vld [vmem:[#allocation5 + $0x24] ss:$16 sps:$4 sm:$0xff]  }
  0x4c   :  { %1268 = vmatpush1.bf16.msra.mxu0 %v2347_v2  ;;  %1391 = vmatpush1.bf16.msra.mxu1 %v2348_v3  ;;  %v2351_v5 = vld [vmem:[#allocation5 + $0x2c] ss:$16 sps:$4 sm:$0xff]   ;;  %v2353_v6 = vld [vmem:[#allocation5 + $0x20] ss:$16 sps:$4 sm:$0xff]   ;;  %v2354_v7 = vld [vmem:[#allocation5 + $0x28] ss:$16 sps:$4 sm:$0xff]  }
  0x4d   :  { %1269 = vmatprep.subr.bf16.mxu0 %v2349_v4  ;;  %1392 = vmatprep.subr.bf16.mxu1 %v2351_v5  ;;  %v2355_v8 = vld [vmem:[#allocation5 + $0x44] ss:$16 sps:$4 sm:$0xff]   ;;  %v2357_v9 = vld [vmem:[#allocation5 + $0x4c] ss:$16 sps:$4 sm:$0xff]   ;;  %v2359_v10 = vld [vmem:[#allocation5 + $0x40] ss:$16 sps:$4 sm:$0xff]  }
  0x4e   :  { %v2360_v11 = vld [vmem:[#allocation5 + $0x48] ss:$16 sps:$4 sm:$0xff]   ;;  %v2361_v12 = vld [vmem:[#allocation5 + $0x64] ss:$16 sps:$4 sm:$0xff]   ;;  %v2363_v13 = vld [vmem:[#allocation5 + $0x6c] ss:$16 sps:$4 sm:$0xff]  }
  0x4f   :  { %v2365_v14 = vld [vmem:[#allocation5 + $0x60] ss:$16 sps:$4 sm:$0xff]   ;;  %v2366_v15 = vld [vmem:[#allocation5 + $0x68] ss:$16 sps:$4 sm:$0xff]   ;;  %v2367_v16 = vld [vmem:[#allocation5 + $0x84] ss:$16 sps:$4 sm:$0xff]  }
  0x50   :  { %1270 = vmatpush1.bf16.msra.mxu0 %v2353_v6  ;;  %1393 = vmatpush1.bf16.msra.mxu1 %v2354_v7  ;;  %v2369_v17 = vld [vmem:[#allocation5 + $0x8c] ss:$16 sps:$4 sm:$0xff]   ;;  %v2371_v18 = vld [vmem:[#allocation5 + $0x80] ss:$16 sps:$4 sm:$0xff]   ;;  %v2372_v19 = vld [vmem:[#allocation5 + $0x88] ss:$16 sps:$4 sm:$0xff]  }
  0x51   :  { %1271 = vmatprep.subr.bf16.mxu0 %v2355_v8  ;;  %1394 = vmatprep.subr.bf16.mxu1 %v2357_v9  ;;  %v2373_v20 = vld [vmem:[#allocation5 + $0xa4] ss:$16 sps:$4 sm:$0xff]   ;;  %v2375_v21 = vld [vmem:[#allocation5 + $0xac] ss:$16 sps:$4 sm:$0xff]   ;;  %v2377_v22 = vld [vmem:[#allocation5 + $0xa0] ss:$16 sps:$4 sm:$0xff]  }
  0x52   :  { %v2378_v23 = vld [vmem:[#allocation5 + $0xa8] ss:$16 sps:$4 sm:$0xff]   ;;  %v2379_v24 = vld [vmem:[#allocation5 + $0xc4] ss:$16 sps:$4 sm:$0xff]   ;;  %v2381_v25 = vld [vmem:[#allocation5 + $0xcc] ss:$16 sps:$4 sm:$0xff]  }
  0x53   :  { %v2383_v26 = vld [vmem:[#allocation5 + $0xc0] ss:$16 sps:$4 sm:$0xff]   ;;  %v2384_v27 = vld [vmem:[#allocation5 + $0xc8] ss:$16 sps:$4 sm:$0xff]   ;;  %v2385_v28 = vld [vmem:[#allocation5 + $0xe4] ss:$16 sps:$4 sm:$0xff]  }
  0x54   :  { %1272 = vmatpush1.bf16.msra.mxu0 %v2359_v10  ;;  %1395 = vmatpush1.bf16.msra.mxu1 %v2360_v11  ;;  %v2387_v29 = vld [vmem:[#allocation5 + $0xec] ss:$16 sps:$4 sm:$0xff]   ;;  %v2389_v30 = vld [vmem:[#allocation5 + $0xe0] ss:$16 sps:$4 sm:$0xff]   ;;  %v2390_v31 = vld [vmem:[#allocation5 + $0xe8] ss:$16 sps:$4 sm:$0xff]  }
  0x55   :  { %1273 = vmatprep.subr.bf16.mxu0 %v2361_v12  ;;  %1396 = vmatprep.subr.bf16.mxu1 %v2363_v13  ;;  %v2391_v32 = vld [vmem:[#allocation5 + $0x104] ss:$16 sps:$4 sm:$0xff]   ;;  %v2393_v33 = vld [vmem:[#allocation5 + $0x10c] ss:$16 sps:$4 sm:$0xff]   ;;  %v2395_v34 = vld [vmem:[#allocation5 + $0x100] ss:$16 sps:$4 sm:$0xff]  }
  0x56   :  { %v2396_v35 = vld [vmem:[#allocation5 + $0x108] ss:$16 sps:$4 sm:$0xff]   ;;  %v2397_v36 = vld [vmem:[#allocation5 + $0x124] ss:$16 sps:$4 sm:$0xff]   ;;  %v2399_v37 = vld [vmem:[#allocation5 + $0x12c] ss:$16 sps:$4 sm:$0xff]  }
  0x57   :  { %v2401_v38 = vld [vmem:[#allocation5 + $0x120] ss:$16 sps:$4 sm:$0xff]   ;;  %v2402_v39 = vld [vmem:[#allocation5 + $0x128] ss:$16 sps:$4 sm:$0xff]   ;;  %v2403_v40 = vld [vmem:[#allocation5 + $0x144] ss:$16 sps:$4 sm:$0xff]  }
  0x58   :  { %1274 = vmatpush1.bf16.msra.mxu0 %v2365_v14  ;;  %1397 = vmatpush1.bf16.msra.mxu1 %v2366_v15  ;;  %v2405_v41 = vld [vmem:[#allocation5 + $0x14c] ss:$16 sps:$4 sm:$0xff]   ;;  %v2407_v42 = vld [vmem:[#allocation5 + $0x140] ss:$16 sps:$4 sm:$0xff]   ;;  %v2408_v43 = vld [vmem:[#allocation5 + $0x148] ss:$16 sps:$4 sm:$0xff]  }
  0x59   :  { %1275 = vmatprep.subr.bf16.mxu0 %v2367_v16  ;;  %1398 = vmatprep.subr.bf16.mxu1 %v2369_v17  ;;  %v2409_v44 = vld [vmem:[#allocation5 + $0x164] ss:$16 sps:$4 sm:$0xff]   ;;  %v2411_v45 = vld [vmem:[#allocation5 + $0x16c] ss:$16 sps:$4 sm:$0xff]   ;;  %v2413_v47 = vld [vmem:[#allocation5 + $0x160] ss:$16 sps:$4 sm:$0xff]  }
  0x5a   :  { %v82_v46 = vld [vmem:[#allocation2 + $0x8] sm:$0xff]  ;;  %v2415_v50 = vld [vmem:[#allocation5 + $0x184] ss:$16 sps:$4 sm:$0xff]   ;;  %v2419_v52 = vld [vmem:[#allocation5 + $0x180] ss:$16 sps:$4 sm:$0xff]   ;;  %vm2802_vm0 = vmmov 0  }
  0x5b   :  { %v88_v48 = vpack.c.bf16 %v82_v46, %v82_v46  ;;  %v2414_v49 = vld [vmem:[#allocation5 + $0x168] ss:$16 sps:$4 sm:$0xff]   ;;  %v2417_v51 = vld [vmem:[#allocation5 + $0x18c] ss:$16 sps:$4 sm:$0xff]   ;;  %v2421_v54 = vld [vmem:[#allocation5 + $0x1a4] ss:$16 sps:$4 sm:$0xff]  }
  0x5c   :  { %1276 = vmatpush1.bf16.msra.mxu0 %v2371_v18  ;;  %1399 = vmatpush1.bf16.msra.mxu1 %v2372_v19  ;;  %v2420_v53 = vld [vmem:[#allocation5 + $0x188] ss:$16 sps:$4 sm:$0xff]   ;;  %v2423_v55 = vld [vmem:[#allocation5 + $0x1ac] ss:$16 sps:$4 sm:$0xff]   ;;  %v2425_v56 = vld [vmem:[#allocation5 + $0x1a0] ss:$16 sps:$4 sm:$0xff]  }
  0x5d   :  { %1277 = vmatprep.subr.bf16.mxu0 %v2373_v20  ;;  %1400 = vmatprep.subr.bf16.mxu1 %v2375_v21  ;;  %v2426_v57 = vld [vmem:[#allocation5 + $0x1a8] ss:$16 sps:$4 sm:$0xff]   ;;  %v2427_v58 = vld [vmem:[#allocation5 + $0x1c4] ss:$16 sps:$4 sm:$0xff]   ;;  %v2429_v59 = vld [vmem:[#allocation5 + $0x1cc] ss:$16 sps:$4 sm:$0xff]  }
  0x5e   :  { %1299 = vmatprep.mubr.bf16.mxu0 %v88_v48  ;;  %1422 = vmatprep.mubr.bf16.mxu1 %v88_v48  ;;  %v2431_v60 = vld [vmem:[#allocation5 + $0x1c0] ss:$16 sps:$4 sm:$0xff]   ;;  %v2432_v61 = vld [vmem:[#allocation5 + $0x1c8] ss:$16 sps:$4 sm:$0xff]   ;;  %v2433_v62 = vld [vmem:[#allocation5 + $0x1e4] ss:$16 sps:$4 sm:$0xff]  }
  0x5f   :  { %v2435_v63 = vld [vmem:[#allocation5 + $0x1ec] ss:$16 sps:$4 sm:$0xff]   ;;  %v2437_v0 = vld [vmem:[#allocation5 + $0x1e0] ss:$16 sps:$4 sm:$0xff]   ;;  %v2438_v1 = vld [vmem:[#allocation5 + $0x1e8] ss:$16 sps:$4 sm:$0xff]  }
  0x60   :  { %1278 = vmatpush1.bf16.msra.mxu0 %v2377_v22  ;;  %1401 = vmatpush1.bf16.msra.mxu1 %v2378_v23  ;;  %v81_v2 = vld [vmem:[#allocation2] sm:$0xff]  ;;  %v2444_v4 = vld [vmem:[#allocation5 + $0x20c] ss:$16 sps:$4 sm:$0xff]   ;;  %v2442_v7 = vld [vmem:[#allocation5 + $0x208] ss:$16 sps:$4 sm:$0xff]  }
  0x61   :  { %1279 = vmatprep.subr.bf16.mxu0 %v2379_v24  ;;  %1402 = vmatprep.subr.bf16.mxu1 %v2381_v25  ;;  %v2441_v3 = vld [vmem:[#allocation5 + $0x204] ss:$16 sps:$4 sm:$0xff]   ;;  %v87_v5 = vpack.c.bf16 %v81_v2, %v81_v2  ;;  %v2439_v6 = vld [vmem:[#allocation5 + $0x200] ss:$16 sps:$4 sm:$0xff]   ;;  %v2450_v9 = vld [vmem:[#allocation5 + $0x22c] ss:$16 sps:$4 sm:$0xff]  }
  0x62   :  { %v2447_v8 = vld [vmem:[#allocation5 + $0x224] ss:$16 sps:$4 sm:$0xff]   ;;  %v2445_v10 = vld [vmem:[#allocation5 + $0x220] ss:$16 sps:$4 sm:$0xff]   ;;  %v2448_v11 = vld [vmem:[#allocation5 + $0x228] ss:$16 sps:$4 sm:$0xff]  }
  0x63   :  { %v2453_v12 = vld [vmem:[#allocation5 + $0x244] ss:$16 sps:$4 sm:$0xff]   ;;  %v2456_v13 = vld [vmem:[#allocation5 + $0x24c] ss:$16 sps:$4 sm:$0xff]   ;;  %v2451_v14 = vld [vmem:[#allocation5 + $0x240] ss:$16 sps:$4 sm:$0xff]  }
  0x64   :  { %1280 = vmatpush1.bf16.msra.mxu0 %v2383_v26  ;;  %1403 = vmatpush1.bf16.msra.mxu1 %v2384_v27  ;;  %v2454_v15 = vld [vmem:[#allocation5 + $0x248] ss:$16 sps:$4 sm:$0xff]   ;;  %v2459_v16 = vld [vmem:[#allocation5 + $0x264] ss:$16 sps:$4 sm:$0xff]   ;;  %v2462_v17 = vld [vmem:[#allocation5 + $0x26c] ss:$16 sps:$4 sm:$0xff]  }
  0x65   :  { %1281 = vmatprep.subr.bf16.mxu0 %v2385_v28  ;;  %1404 = vmatprep.subr.bf16.mxu1 %v2387_v29  ;;  %v2457_v18 = vld [vmem:[#allocation5 + $0x260] ss:$16 sps:$4 sm:$0xff]   ;;  %v2460_v19 = vld [vmem:[#allocation5 + $0x268] ss:$16 sps:$4 sm:$0xff]   ;;  %v2465_v20 = vld [vmem:[#allocation5 + $0x284] ss:$16 sps:$4 sm:$0xff]  }
  0x66   :  { %v2468_v21 = vld [vmem:[#allocation5 + $0x28c] ss:$16 sps:$4 sm:$0xff]   ;;  %v2463_v22 = vld [vmem:[#allocation5 + $0x280] ss:$16 sps:$4 sm:$0xff]   ;;  %v2466_v23 = vld [vmem:[#allocation5 + $0x288] ss:$16 sps:$4 sm:$0xff]  }
  0x67   :  { %v2471_v24 = vld [vmem:[#allocation5 + $0x2a4] ss:$16 sps:$4 sm:$0xff]   ;;  %v2474_v25 = vld [vmem:[#allocation5 + $0x2ac] ss:$16 sps:$4 sm:$0xff]   ;;  %v2469_v26 = vld [vmem:[#allocation5 + $0x2a0] ss:$16 sps:$4 sm:$0xff]  }
  0x68   :  { %1282 = vmatpush1.bf16.msra.mxu0 %v2389_v30  ;;  %1405 = vmatpush1.bf16.msra.mxu1 %v2390_v31  ;;  %v2472_v27 = vld [vmem:[#allocation5 + $0x2a8] ss:$16 sps:$4 sm:$0xff]   ;;  %v2477_v28 = vld [vmem:[#allocation5 + $0x2c4] ss:$16 sps:$4 sm:$0xff]   ;;  %v2480_v29 = vld [vmem:[#allocation5 + $0x2cc] ss:$16 sps:$4 sm:$0xff]  }
  0x69   :  { %1283 = vmatprep.subr.bf16.mxu0 %v2391_v32  ;;  %1406 = vmatprep.subr.bf16.mxu1 %v2393_v33  ;;  %v84_v30 = vld [vmem:[#allocation2 + $0x18] sm:$0xff]  ;;  %v2475_v31 = vld [vmem:[#allocation5 + $0x2c0] ss:$16 sps:$4 sm:$0xff]   ;;  %v2501_v46 = vld [vmem:[#allocation5 + $0x344] ss:$16 sps:$4 sm:$0xff]  }
  0x6a   :  { %v90_v32 = vpack.c.bf16 %v84_v30, %v84_v30  ;;  %v2478_v33 = vld [vmem:[#allocation5 + $0x2c8] ss:$16 sps:$4 sm:$0xff]   ;;  %v2499_v48 = vld [vmem:[#allocation5 + $0x340] ss:$16 sps:$4 sm:$0xff]   ;;  %v2531_v2 = vld [vmem:[#allocation5 + $0x3e4] ss:$16 sps:$4 sm:$0xff]  }
  0x6b   :  { %v2567_v30 = vld [vmem:[#allocation5 + $0x4a4] ss:$16 sps:$4 sm:$0xff]  }
  0x6c   :  { %1284 = vmatpush1.bf16.msra.mxu0 %v2395_v34  ;;  %1407 = vmatpush1.bf16.msra.mxu1 %v2396_v35  ;;  %v2483_v34 = vld [vmem:[#allocation5 + $0x2e4] ss:$16 sps:$4 sm:$0xff]   ;;  %v2486_v35 = vld [vmem:[#allocation5 + $0x2ec] ss:$16 sps:$4 sm:$0xff]  }
  0x6d   :  { %1285 = vmatprep.subr.bf16.mxu0 %v2397_v36  ;;  %1408 = vmatprep.subr.bf16.mxu1 %v2399_v37  ;;  %v2481_v36 = vld [vmem:[#allocation5 + $0x2e0] ss:$16 sps:$4 sm:$0xff]   ;;  %v2484_v37 = vld [vmem:[#allocation5 + $0x2e8] ss:$16 sps:$4 sm:$0xff]  }
  0x70   :  { %1286 = vmatpush1.bf16.msra.mxu0 %v2401_v38  ;;  %1409 = vmatpush1.bf16.msra.mxu1 %v2402_v39  ;;  %v2489_v38 = vld [vmem:[#allocation5 + $0x304] ss:$16 sps:$4 sm:$0xff]   ;;  %v2492_v39 = vld [vmem:[#allocation5 + $0x30c] ss:$16 sps:$4 sm:$0xff]  }
  0x71   :  { %1287 = vmatprep.subr.bf16.mxu0 %v2403_v40  ;;  %1410 = vmatprep.subr.bf16.mxu1 %v2405_v41  ;;  %v2487_v40 = vld [vmem:[#allocation5 + $0x300] ss:$16 sps:$4 sm:$0xff]   ;;  %v2490_v41 = vld [vmem:[#allocation5 + $0x308] ss:$16 sps:$4 sm:$0xff]  }
  0x74   :  { %1288 = vmatpush1.bf16.msra.mxu0 %v2407_v42  ;;  %1411 = vmatpush1.bf16.msra.mxu1 %v2408_v43  ;;  %v2495_v42 = vld [vmem:[#allocation5 + $0x324] ss:$16 sps:$4 sm:$0xff]   ;;  %v2498_v43 = vld [vmem:[#allocation5 + $0x32c] ss:$16 sps:$4 sm:$0xff]  }
  0x75   :  { %1289 = vmatprep.subr.bf16.mxu0 %v2409_v44  ;;  %1412 = vmatprep.subr.bf16.mxu1 %v2411_v45  ;;  %v2493_v44 = vld [vmem:[#allocation5 + $0x320] ss:$16 sps:$4 sm:$0xff]   ;;  %v2496_v45 = vld [vmem:[#allocation5 + $0x328] ss:$16 sps:$4 sm:$0xff]  }
  0x78   :  { %1290 = vmatpush1.bf16.msra.mxu0 %v2413_v47  ;;  %1413 = vmatpush1.bf16.msra.mxu1 %v2414_v49  ;;  %v2504_v47 = vld [vmem:[#allocation5 + $0x34c] ss:$16 sps:$4 sm:$0xff]   ;;  %v2502_v49 = vld [vmem:[#allocation5 + $0x348] ss:$16 sps:$4 sm:$0xff]  }
  0x79   :  { %1291 = vmatprep.subr.bf16.mxu0 %v2415_v50  ;;  %1414 = vmatprep.subr.bf16.mxu1 %v2417_v51  ;;  %v2507_v50 = vld [vmem:[#allocation5 + $0x364] ss:$16 sps:$4 sm:$0xff]   ;;  %v2510_v51 = vld [vmem:[#allocation5 + $0x36c] ss:$16 sps:$4 sm:$0xff]  }
  0x7c   :  { %1292 = vmatpush1.bf16.msra.mxu0 %v2419_v52  ;;  %1415 = vmatpush1.bf16.msra.mxu1 %v2420_v53  ;;  %v2505_v52 = vld [vmem:[#allocation5 + $0x360] ss:$16 sps:$4 sm:$0xff]   ;;  %v2508_v53 = vld [vmem:[#allocation5 + $0x368] ss:$16 sps:$4 sm:$0xff]  }
  0x7d   :  { %1293 = vmatprep.subr.bf16.mxu0 %v2421_v54  ;;  %1416 = vmatprep.subr.bf16.mxu1 %v2423_v55  ;;  %v2513_v54 = vld [vmem:[#allocation5 + $0x384] ss:$16 sps:$4 sm:$0xff]   ;;  %v2516_v55 = vld [vmem:[#allocation5 + $0x38c] ss:$16 sps:$4 sm:$0xff]  }
  0x80   :  { %1294 = vmatpush1.bf16.msra.mxu0 %v2425_v56  ;;  %1417 = vmatpush1.bf16.msra.mxu1 %v2426_v57  ;;  %v2511_v56 = vld [vmem:[#allocation5 + $0x380] ss:$16 sps:$4 sm:$0xff]   ;;  %v2514_v57 = vld [vmem:[#allocation5 + $0x388] ss:$16 sps:$4 sm:$0xff]  }
  0x81   :  { %1295 = vmatprep.subr.bf16.mxu0 %v2427_v58  ;;  %1418 = vmatprep.subr.bf16.mxu1 %v2429_v59  ;;  %v2519_v58 = vld [vmem:[#allocation5 + $0x3a4] ss:$16 sps:$4 sm:$0xff]   ;;  %v2522_v59 = vld [vmem:[#allocation5 + $0x3ac] ss:$16 sps:$4 sm:$0xff]  }
  0x84   :  { %1296 = vmatpush1.bf16.msra.mxu0 %v2431_v60  ;;  %1419 = vmatpush1.bf16.msra.mxu1 %v2432_v61  ;;  %v2517_v60 = vld [vmem:[#allocation5 + $0x3a0] ss:$16 sps:$4 sm:$0xff]   ;;  %v2520_v61 = vld [vmem:[#allocation5 + $0x3a8] ss:$16 sps:$4 sm:$0xff]  }
  0x85   :  { %1297 = vmatprep.subr.bf16.mxu0 %v2433_v62  ;;  %1420 = vmatprep.subr.bf16.mxu1 %v2435_v63  ;;  %v2525_v62 = vld [vmem:[#allocation5 + $0x3c4] ss:$16 sps:$4 sm:$0xff]   ;;  %v2528_v63 = vld [vmem:[#allocation5 + $0x3cc] ss:$16 sps:$4 sm:$0xff]  }
  0x88   :  { %1298 = vmatpush1.bf16.msra.mxu0 %v2437_v0  ;;  %1421 = vmatpush1.bf16.msra.mxu1 %v2438_v1  ;;  %v2523_v0 = vld [vmem:[#allocation5 + $0x3c0] ss:$16 sps:$4 sm:$0xff]   ;;  %v2526_v1 = vld [vmem:[#allocation5 + $0x3c8] ss:$16 sps:$4 sm:$0xff]  }
  0x89   :  { %1308 = vmatprep.subr.bf16.mxu0 %v2441_v3  ;;  %1431 = vmatprep.subr.bf16.mxu1 %v2444_v4  ;;  %v2534_v3 = vld [vmem:[#allocation5 + $0x3ec] ss:$16 sps:$4 sm:$0xff]   ;;  %v2529_v4 = vld [vmem:[#allocation5 + $0x3e0] ss:$16 sps:$4 sm:$0xff]  }
  0x8b   :  { %1300 = vmatmul.mubr.bf16.vlgmr.msra.gmra.mrb[0].mxu0 %v87_v5  ;;  %1423 = vmatmul.mubr.bf16.vlgmr.msra.gmra.mrb[0].mxu1 %v87_v5  ;;  %v2532_v5 = vld [vmem:[#allocation5 + $0x3e8] ss:$16 sps:$4 sm:$0xff]  }
  0x8c   :  { %1309 = vmatpush1.bf16.msra.mxu0 %v2439_v6  ;;  %1432 = vmatpush1.bf16.msra.mxu1 %v2442_v7  ;;  %v2537_v6 = vld [vmem:[#allocation5 + $0x404] ss:$16 sps:$4 sm:$0xff]  }
  0x8d   :  { %1310 = vmatprep.subr.bf16.mxu0 %v2447_v8  ;;  %1433 = vmatprep.subr.bf16.mxu1 %v2450_v9  ;;  %v83_v7 = vld [vmem:[#allocation2 + $0x10] sm:$0xff]  ;;  %v2540_v8 = vld [vmem:[#allocation5 + $0x40c] ss:$16 sps:$4 sm:$0xff]  }
  0x8e   :  { %1340 = vmatprep.mubr.bf16.mxu0 %v90_v32  ;;  %1463 = vmatprep.mubr.bf16.mxu1 %v90_v32  ;;  %v2535_v9 = vld [vmem:[#allocation5 + $0x400] ss:$16 sps:$4 sm:$0xff]  }
  0x8f   :  { %v2565_v32 = vld [vmem:[#allocation5 + $0x4a0] ss:$16 sps:$4 sm:$0xff]  }
  0x90   :  { %1311 = vmatpush1.bf16.msra.mxu0 %v2445_v10  ;;  %1434 = vmatpush1.bf16.msra.mxu1 %v2448_v11  ;;  %v89_v10 = vpack.c.bf16 %v83_v7, %v83_v7  ;;  %v2538_v11 = vld [vmem:[#allocation5 + $0x408] ss:$16 sps:$4 sm:$0xff]   ;;  %v2630_v7 = vld [vmem:[#allocation5 + $0x5ec] ss:$16 sps:$4 sm:$0xff]  }
  0x91   :  { %1312 = vmatprep.subr.bf16.mxu0 %v2453_v12  ;;  %1435 = vmatprep.subr.bf16.mxu1 %v2456_v13  ;;  %v2543_v12 = vld [vmem:[#allocation5 + $0x424] ss:$16 sps:$4 sm:$0xff]   ;;  %v2546_v13 = vld [vmem:[#allocation5 + $0x42c] ss:$16 sps:$4 sm:$0xff]  }
  0x94   :  { %1313 = vmatpush1.bf16.msra.mxu0 %v2451_v14  ;;  %1436 = vmatpush1.bf16.msra.mxu1 %v2454_v15  ;;  %v86_v14 = vld [vmem:[#allocation2 + $0x28] sm:$0xff]  ;;  %v2541_v15 = vld [vmem:[#allocation5 + $0x420] ss:$16 sps:$4 sm:$0xff]  }
  0x95   :  { %1314 = vmatprep.subr.bf16.mxu0 %v2459_v16  ;;  %1437 = vmatprep.subr.bf16.mxu1 %v2462_v17  ;;  %v92_v16 = vpack.c.bf16 %v86_v14, %v86_v14  ;;  %v2544_v17 = vld [vmem:[#allocation5 + $0x428] ss:$16 sps:$4 sm:$0xff]   ;;  %v2633_v14 = vld [vmem:[#allocation7] sm:$0xff]  }
  0x98   :  { %1315 = vmatpush1.bf16.msra.mxu0 %v2457_v18  ;;  %1438 = vmatpush1.bf16.msra.mxu1 %v2460_v19  ;;  %v2549_v18 = vld [vmem:[#allocation5 + $0x444] ss:$16 sps:$4 sm:$0xff]   ;;  %v2552_v19 = vld [vmem:[#allocation5 + $0x44c] ss:$16 sps:$4 sm:$0xff]  }
  0x99   :  { %1316 = vmatprep.subr.bf16.mxu0 %v2465_v20  ;;  %1439 = vmatprep.subr.bf16.mxu1 %v2468_v21  ;;  %v2547_v20 = vld [vmem:[#allocation5 + $0x440] ss:$16 sps:$4 sm:$0xff]   ;;  %v2550_v21 = vld [vmem:[#allocation5 + $0x448] ss:$16 sps:$4 sm:$0xff]  }
  0x9c   :  { %1317 = vmatpush1.bf16.msra.mxu0 %v2463_v22  ;;  %1440 = vmatpush1.bf16.msra.mxu1 %v2466_v23  ;;  %v2555_v22 = vld [vmem:[#allocation5 + $0x464] ss:$16 sps:$4 sm:$0xff]   ;;  %v2558_v23 = vld [vmem:[#allocation5 + $0x46c] ss:$16 sps:$4 sm:$0xff]  }
  0x9d   :  { %1318 = vmatprep.subr.bf16.mxu0 %v2471_v24  ;;  %1441 = vmatprep.subr.bf16.mxu1 %v2474_v25  ;;  %v2553_v24 = vld [vmem:[#allocation5 + $0x460] ss:$16 sps:$4 sm:$0xff]   ;;  %v2556_v25 = vld [vmem:[#allocation5 + $0x468] ss:$16 sps:$4 sm:$0xff]  }
  0xa0   :  { %1319 = vmatpush1.bf16.msra.mxu0 %v2469_v26  ;;  %1442 = vmatpush1.bf16.msra.mxu1 %v2472_v27  ;;  %v2561_v26 = vld [vmem:[#allocation5 + $0x484] ss:$16 sps:$4 sm:$0xff]   ;;  %v2564_v27 = vld [vmem:[#allocation5 + $0x48c] ss:$16 sps:$4 sm:$0xff]  }
  0xa1   :  { %1320 = vmatprep.subr.bf16.mxu0 %v2477_v28  ;;  %1443 = vmatprep.subr.bf16.mxu1 %v2480_v29  ;;  %v2559_v28 = vld [vmem:[#allocation5 + $0x480] ss:$16 sps:$4 sm:$0xff]   ;;  %v2562_v29 = vld [vmem:[#allocation5 + $0x488] ss:$16 sps:$4 sm:$0xff]  }
  0xa4   :  { %1321 = vmatpush1.bf16.msra.mxu0 %v2475_v31  ;;  %1444 = vmatpush1.bf16.msra.mxu1 %v2478_v33  ;;  %v2570_v31 = vld [vmem:[#allocation5 + $0x4ac] ss:$16 sps:$4 sm:$0xff]   ;;  %v2568_v33 = vld [vmem:[#allocation5 + $0x4a8] ss:$16 sps:$4 sm:$0xff]  }
  0xa5   :  { %1322 = vmatprep.subr.bf16.mxu0 %v2483_v34  ;;  %1445 = vmatprep.subr.bf16.mxu1 %v2486_v35  ;;  %v2573_v34 = vld [vmem:[#allocation5 + $0x4c4] ss:$16 sps:$4 sm:$0xff]   ;;  %v2576_v35 = vld [vmem:[#allocation5 + $0x4cc] ss:$16 sps:$4 sm:$0xff]  }
  0xa8   :  { %1323 = vmatpush1.bf16.msra.mxu0 %v2481_v36  ;;  %1446 = vmatpush1.bf16.msra.mxu1 %v2484_v37  ;;  %v2571_v36 = vld [vmem:[#allocation5 + $0x4c0] ss:$16 sps:$4 sm:$0xff]   ;;  %v2574_v37 = vld [vmem:[#allocation5 + $0x4c8] ss:$16 sps:$4 sm:$0xff]  }
  0xa9   :  { %1324 = vmatprep.subr.bf16.mxu0 %v2489_v38  ;;  %1447 = vmatprep.subr.bf16.mxu1 %v2492_v39  ;;  %v2579_v38 = vld [vmem:[#allocation5 + $0x4e4] ss:$16 sps:$4 sm:$0xff]   ;;  %v2582_v39 = vld [vmem:[#allocation5 + $0x4ec] ss:$16 sps:$4 sm:$0xff]  }
  0xac   :  { %1325 = vmatpush1.bf16.msra.mxu0 %v2487_v40  ;;  %1448 = vmatpush1.bf16.msra.mxu1 %v2490_v41  ;;  %v2577_v40 = vld [vmem:[#allocation5 + $0x4e0] ss:$16 sps:$4 sm:$0xff]   ;;  %v2580_v41 = vld [vmem:[#allocation5 + $0x4e8] ss:$16 sps:$4 sm:$0xff]  }
  0xad   :  { %1326 = vmatprep.subr.bf16.mxu0 %v2495_v42  ;;  %1449 = vmatprep.subr.bf16.mxu1 %v2498_v43  ;;  %v2585_v42 = vld [vmem:[#allocation5 + $0x504] ss:$16 sps:$4 sm:$0xff]   ;;  %v2588_v43 = vld [vmem:[#allocation5 + $0x50c] ss:$16 sps:$4 sm:$0xff]  }
  0xb0   :  { %1327 = vmatpush1.bf16.msra.mxu0 %v2493_v44  ;;  %1450 = vmatpush1.bf16.msra.mxu1 %v2496_v45  ;;  %v2583_v44 = vld [vmem:[#allocation5 + $0x500] ss:$16 sps:$4 sm:$0xff]   ;;  %v2586_v45 = vld [vmem:[#allocation5 + $0x508] ss:$16 sps:$4 sm:$0xff]  }
  0xb1   :  { %1328 = vmatprep.subr.bf16.mxu0 %v2501_v46  ;;  %1451 = vmatprep.subr.bf16.mxu1 %v2504_v47  ;;  %v2591_v46 = vld [vmem:[#allocation5 + $0x524] ss:$16 sps:$4 sm:$0xff]   ;;  %v2594_v47 = vld [vmem:[#allocation5 + $0x52c] ss:$16 sps:$4 sm:$0xff]  }
  0xb4   :  { %1329 = vmatpush1.bf16.msra.mxu0 %v2499_v48  ;;  %1452 = vmatpush1.bf16.msra.mxu1 %v2502_v49  ;;  %v2589_v48 = vld [vmem:[#allocation5 + $0x520] ss:$16 sps:$4 sm:$0xff]   ;;  %v2592_v49 = vld [vmem:[#allocation5 + $0x528] ss:$16 sps:$4 sm:$0xff]  }
  0xb5   :  { %1330 = vmatprep.subr.bf16.mxu0 %v2507_v50  ;;  %1453 = vmatprep.subr.bf16.mxu1 %v2510_v51  ;;  %v2597_v50 = vld [vmem:[#allocation5 + $0x544] ss:$16 sps:$4 sm:$0xff]   ;;  %v2600_v51 = vld [vmem:[#allocation5 + $0x54c] ss:$16 sps:$4 sm:$0xff]  }
  0xb8   :  { %1331 = vmatpush1.bf16.msra.mxu0 %v2505_v52  ;;  %1454 = vmatpush1.bf16.msra.mxu1 %v2508_v53  ;;  %v2595_v52 = vld [vmem:[#allocation5 + $0x540] ss:$16 sps:$4 sm:$0xff]   ;;  %v2598_v53 = vld [vmem:[#allocation5 + $0x548] ss:$16 sps:$4 sm:$0xff]  }
  0xb9   :  { %1332 = vmatprep.subr.bf16.mxu0 %v2513_v54  ;;  %1455 = vmatprep.subr.bf16.mxu1 %v2516_v55  ;;  %v2603_v54 = vld [vmem:[#allocation5 + $0x564] ss:$16 sps:$4 sm:$0xff]   ;;  %v2606_v55 = vld [vmem:[#allocation5 + $0x56c] ss:$16 sps:$4 sm:$0xff]  }
  0xbc   :  { %1333 = vmatpush1.bf16.msra.mxu0 %v2511_v56  ;;  %1456 = vmatpush1.bf16.msra.mxu1 %v2514_v57  ;;  %v2601_v56 = vld [vmem:[#allocation5 + $0x560] ss:$16 sps:$4 sm:$0xff]   ;;  %v2604_v57 = vld [vmem:[#allocation5 + $0x568] ss:$16 sps:$4 sm:$0xff]  }
  0xbd   :  { %1334 = vmatprep.subr.bf16.mxu0 %v2519_v58  ;;  %1457 = vmatprep.subr.bf16.mxu1 %v2522_v59  ;;  %v2609_v58 = vld [vmem:[#allocation5 + $0x584] ss:$16 sps:$4 sm:$0xff]   ;;  %v2612_v59 = vld [vmem:[#allocation5 + $0x58c] ss:$16 sps:$4 sm:$0xff]  }
  0xc0   :  { %1335 = vmatpush1.bf16.msra.mxu0 %v2517_v60  ;;  %1458 = vmatpush1.bf16.msra.mxu1 %v2520_v61  ;;  %v2607_v60 = vld [vmem:[#allocation5 + $0x580] ss:$16 sps:$4 sm:$0xff]   ;;  %v2610_v61 = vld [vmem:[#allocation5 + $0x588] ss:$16 sps:$4 sm:$0xff]  }
  0xc1   :  { %1336 = vmatprep.subr.bf16.mxu0 %v2525_v62  ;;  %1459 = vmatprep.subr.bf16.mxu1 %v2528_v63  ;;  %v2615_v62 = vld [vmem:[#allocation5 + $0x5a4] ss:$16 sps:$4 sm:$0xff]   ;;  %v2618_v63 = vld [vmem:[#allocation5 + $0x5ac] ss:$16 sps:$4 sm:$0xff]  }
  0xc4   :  { %1337 = vmatpush1.bf16.msra.mxu0 %v2523_v0  ;;  %1460 = vmatpush1.bf16.msra.mxu1 %v2526_v1  ;;  %v2613_v0 = vld [vmem:[#allocation5 + $0x5a0] ss:$16 sps:$4 sm:$0xff]   ;;  %v2616_v1 = vld [vmem:[#allocation5 + $0x5a8] ss:$16 sps:$4 sm:$0xff]  }
  0xc5   :  { %1338 = vmatprep.subr.bf16.mxu0 %v2531_v2  ;;  %1461 = vmatprep.subr.bf16.mxu1 %v2534_v3  ;;  %v2621_v2 = vld [vmem:[#allocation5 + $0x5c4] ss:$16 sps:$4 sm:$0xff]   ;;  %v2624_v3 = vld [vmem:[#allocation5 + $0x5cc] ss:$16 sps:$4 sm:$0xff]  }
  0xc8   :  { %1339 = vmatpush1.bf16.msra.mxu0 %v2529_v4  ;;  %1462 = vmatpush1.bf16.msra.mxu1 %v2532_v5  ;;  %v2619_v4 = vld [vmem:[#allocation5 + $0x5c0] ss:$16 sps:$4 sm:$0xff]   ;;  %v2622_v5 = vld [vmem:[#allocation5 + $0x5c8] ss:$16 sps:$4 sm:$0xff]  }
  0xc9   :  { %1349 = vmatprep.subr.bf16.mxu0 %v2537_v6  ;;  %1472 = vmatprep.subr.bf16.mxu1 %v2540_v8  ;;  %v2627_v6 = vld [vmem:[#allocation5 + $0x5e4] ss:$16 sps:$4 sm:$0xff]   ;;  %v2625_v8 = vld [vmem:[#allocation5 + $0x5e0] ss:$16 sps:$4 sm:$0xff]  }
  0xcb   :  { %1341 = vmatmul.mubr.bf16.vlgmr.msra.gmra.mrb[0].mxu0 %v89_v10  ;;  %1464 = vmatmul.mubr.bf16.vlgmr.msra.gmra.mrb[0].mxu1 %v89_v10  ;;  %v85_v10 = vld [vmem:[#allocation2 + $0x20] sm:$0xff] }
  0xcc   :  { %1350 = vmatpush1.bf16.msra.mxu0 %v2535_v9  ;;  %1473 = vmatpush1.bf16.msra.mxu1 %v2538_v11  ;;  %v2628_v9 = vld [vmem:[#allocation5 + $0x5e8] ss:$16 sps:$4 sm:$0xff]   ;;  %v2631_v11 = vld [vmem:[#allocation7 + $0x40] sm:$0xff]  }
  0xcd   :  { %1351 = vmatprep.subr.bf16.mxu0 %v2543_v12  ;;  %1474 = vmatprep.subr.bf16.mxu1 %v2546_v13  ;;  %v2632_v12 = vld [vmem:[#allocation7 + $0xc0] sm:$0xff]   ;;  %v91_v13 = vpack.c.bf16 %v85_v10, %v85_v10 }
  0xce   :  { %1381 = vmatprep.mubr.bf16.mxu0 %v92_v16  ;;  %1504 = vmatprep.mubr.bf16.mxu1 %v92_v16  ;;  %v2635_v16 = vld [vmem:[#allocation7 + $0x48] sm:$0xff]   ;;  %v2663_v10 = vld [vmem:[#allocation8] sm:$0xff]  }
  0xd0   :  { %1352 = vmatpush1.bf16.msra.mxu0 %v2541_v15  ;;  %1475 = vmatpush1.bf16.msra.mxu1 %v2544_v17  ;;  %v2634_v15 = vld [vmem:[#allocation7 + $0x80] sm:$0xff]   ;;  %v2636_v17 = vld [vmem:[#allocation7 + $0xc8] sm:$0xff]  }
  0xd1   :  { %1353 = vmatprep.subr.bf16.mxu0 %v2549_v18  ;;  %1476 = vmatprep.subr.bf16.mxu1 %v2552_v19  ;;  %v2637_v18 = vld [vmem:[#allocation7 + $0x8] sm:$0xff]  }
  0xd2   :  { %v2638_v19 = vld [vmem:[#allocation7 + $0x88] sm:$0xff]  }
  0xd4   :  { %1354 = vmatpush1.bf16.msra.mxu0 %v2547_v20  ;;  %1477 = vmatpush1.bf16.msra.mxu1 %v2550_v21  ;;  %v2639_v20 = vld [vmem:[#allocation7 + $0x50] sm:$0xff]  }
  0xd5   :  { %1355 = vmatprep.subr.bf16.mxu0 %v2555_v22  ;;  %1478 = vmatprep.subr.bf16.mxu1 %v2558_v23  ;;  %v2640_v21 = vld [vmem:[#allocation7 + $0xd0] sm:$0xff]  }
  0xd6   :  { %v2641_v22 = vld [vmem:[#allocation7 + $0x10] sm:$0xff]  }
  0xd7   :  { %v2642_v23 = vld [vmem:[#allocation7 + $0x90] sm:$0xff]  }
  0xd8   :  { %1356 = vmatpush1.bf16.msra.mxu0 %v2553_v24  ;;  %1479 = vmatpush1.bf16.msra.mxu1 %v2556_v25  ;;  %v2643_v24 = vld [vmem:[#allocation7 + $0x58] sm:$0xff]  }
  0xd9   :  { %1357 = vmatprep.subr.bf16.mxu0 %v2561_v26  ;;  %1480 = vmatprep.subr.bf16.mxu1 %v2564_v27  ;;  %v2644_v25 = vld [vmem:[#allocation7 + $0xd8] sm:$0xff]  }
  0xda   :  { %v2645_v26 = vld [vmem:[#allocation7 + $0x18] sm:$0xff]  }
  0xdb   :  { %v2646_v27 = vld [vmem:[#allocation7 + $0x98] sm:$0xff]  }
  0xdc   :  { %1358 = vmatpush1.bf16.msra.mxu0 %v2559_v28  ;;  %1481 = vmatpush1.bf16.msra.mxu1 %v2562_v29  ;;  %v2647_v28 = vld [vmem:[#allocation7 + $0x60] sm:$0xff]  }
  0xdd   :  { %1359 = vmatprep.subr.bf16.mxu0 %v2567_v30  ;;  %1482 = vmatprep.subr.bf16.mxu1 %v2570_v31  ;;  %v2648_v29 = vld [vmem:[#allocation7 + $0xe0] sm:$0xff]  }
  0xde   :  { %v2649_v30 = vld [vmem:[#allocation7 + $0x20] sm:$0xff]  }
  0xdf   :  { %v2650_v31 = vld [vmem:[#allocation7 + $0xa0] sm:$0xff]  }
  0xe0   :  { %1360 = vmatpush1.bf16.msra.mxu0 %v2565_v32  ;;  %1483 = vmatpush1.bf16.msra.mxu1 %v2568_v33  ;;  %v2651_v32 = vld [vmem:[#allocation7 + $0x68] sm:$0xff]  }
  0xe1   :  { %1361 = vmatprep.subr.bf16.mxu0 %v2573_v34  ;;  %1484 = vmatprep.subr.bf16.mxu1 %v2576_v35  ;;  %v2652_v33 = vld [vmem:[#allocation7 + $0xe8] sm:$0xff]  }
  0xe2   :  { %v2653_v34 = vld [vmem:[#allocation7 + $0x28] sm:$0xff]  }
  0xe3   :  { %v2654_v35 = vld [vmem:[#allocation7 + $0xa8] sm:$0xff]  }
  0xe4   :  { %1362 = vmatpush1.bf16.msra.mxu0 %v2571_v36  ;;  %1485 = vmatpush1.bf16.msra.mxu1 %v2574_v37  ;;  %v2655_v36 = vld [vmem:[#allocation7 + $0x70] sm:$0xff]  }
  0xe5   :  { %1363 = vmatprep.subr.bf16.mxu0 %v2579_v38  ;;  %1486 = vmatprep.subr.bf16.mxu1 %v2582_v39  ;;  %v2656_v37 = vld [vmem:[#allocation7 + $0xf0] sm:$0xff]  }
  0xe6   :  { %v2657_v38 = vld [vmem:[#allocation7 + $0x30] sm:$0xff]  }
  0xe7   :  { %v2658_v39 = vld [vmem:[#allocation7 + $0xb0] sm:$0xff]  }
  0xe8   :  { %1364 = vmatpush1.bf16.msra.mxu0 %v2577_v40  ;;  %1487 = vmatpush1.bf16.msra.mxu1 %v2580_v41  ;;  %v2659_v40 = vld [vmem:[#allocation7 + $0x78] sm:$0xff]  }
  0xe9   :  { %1365 = vmatprep.subr.bf16.mxu0 %v2585_v42  ;;  %1488 = vmatprep.subr.bf16.mxu1 %v2588_v43  ;;  %v2660_v41 = vld [vmem:[#allocation7 + $0xf8] sm:$0xff]  }
  0xea   :  { %v2661_v42 = vld [vmem:[#allocation7 + $0x38] sm:$0xff]  }
  0xeb   :  { %v2662_v43 = vld [vmem:[#allocation7 + $0xb8] sm:$0xff]  }
  0xec   :  { %1366 = vmatpush1.bf16.msra.mxu0 %v2583_v44  ;;  %1489 = vmatpush1.bf16.msra.mxu1 %v2586_v45  ;;  %v2801_v44 = vmov 0.0   ;;  %v287_v45 = vlaneseq }
  0xed   :  { %1367 = vmatprep.subr.bf16.mxu0 %v2591_v46  ;;  %1490 = vmatprep.subr.bf16.mxu1 %v2594_v47 }
  0xee   :  { %v288_v46 = vshrl.u32 %v287_v45, 7 }
  0xf0   :  { %1368 = vmatpush1.bf16.msra.mxu0 %v2589_v48  ;;  %1491 = vmatpush1.bf16.msra.mxu1 %v2592_v49  ;;  %v289_v47 = vsub.s32 0, %v288_v46  ;;  %v297_v48 = vsub.s32 2, %v288_v46  ;;  %v285_v49 = vld [vmem:[%s2915_s2] sm:$0xf] }
  0xf1   :  { %1369 = vmatprep.subr.bf16.mxu0 %v2597_v50  ;;  %1492 = vmatprep.subr.bf16.mxu1 %v2600_v51  ;;  %v293_v50 = vsub.s32 1, %v288_v46  ;;  %v301_v51 = vsub.s32 3, %v288_v46 }
  0xf4   :  { %1370 = vmatpush1.bf16.msra.mxu0 %v2595_v52  ;;  %1493 = vmatpush1.bf16.msra.mxu1 %v2598_v53  ;;  %v290_v52 = vrot.slane %v285_v49, %v289_v47  ;;  %v298_v53 = vrot.slane %v285_v49, %v297_v48 }
  0xf5   :  { %1371 = vmatprep.subr.bf16.mxu0 %v2603_v54  ;;  %1494 = vmatprep.subr.bf16.mxu1 %v2606_v55  ;;  %v294_v54 = vrot.slane %v285_v49, %v293_v50  ;;  %v302_v55 = vrot.slane %v285_v49, %v301_v51 }
  0xf8   :  { %1372 = vmatpush1.bf16.msra.mxu0 %v2601_v56  ;;  %1495 = vmatpush1.bf16.msra.mxu1 %v2604_v57 }
  0xf9   :  { %1373 = vmatprep.subr.bf16.mxu0 %v2609_v58  ;;  %1496 = vmatprep.subr.bf16.mxu1 %v2612_v59 }
  0xfc   :  { %1374 = vmatpush1.bf16.msra.mxu0 %v2607_v60  ;;  %1497 = vmatpush1.bf16.msra.mxu1 %v2610_v61 }
  0xfd   :  { %1375 = vmatprep.subr.bf16.mxu0 %v2615_v62  ;;  %1498 = vmatprep.subr.bf16.mxu1 %v2618_v63 }
 0x100   :  { %1376 = vmatpush1.bf16.msra.mxu0 %v2613_v0  ;;  %1499 = vmatpush1.bf16.msra.mxu1 %v2616_v1 }
 0x101   :  { %1377 = vmatprep.subr.bf16.mxu0 %v2621_v2  ;;  %1500 = vmatprep.subr.bf16.mxu1 %v2624_v3 }
 0x104   :  { %1378 = vmatpush1.bf16.msra.mxu0 %v2619_v4  ;;  %1501 = vmatpush1.bf16.msra.mxu1 %v2622_v5 }
 0x105   :  { %1379 = vmatprep.subr.bf16.mxu0 %v2627_v6  ;;  %1502 = vmatprep.subr.bf16.mxu1 %v2630_v7 }
 0x108   :  { %1380 = vmatpush1.bf16.msra.mxu0 %v2625_v8  ;;  %1503 = vmatpush1.bf16.msra.mxu1 %v2628_v9 }
 0x109   :  { %2239 = vmatprep.subr.bf16.mxu0 %v2631_v11  ;;  %2261 = vmatprep.subr.bf16.mxu1 %v2632_v12 }
 0x10b   :  { %1382 = vmatmul.mubr.bf16.vlgmr.msra.gmra.mrb[0].mxu0 %v91_v13  ;;  %1505 = vmatmul.mubr.bf16.vlgmr.msra.gmra.mrb[0].mxu1 %v91_v13  ;;  %v2664_v13 = vld [vmem:[#allocation8 + $0x8] sm:$0xff]  }
 0x10c   :  { %2240 = vmatpush3.bf16.msra.mxu0 %v2633_v14  ;;  %2262 = vmatpush3.bf16.msra.mxu1 %v2634_v15  ;;  %v2665_v14 = vld [vmem:[#allocation8 + $0x10] sm:$0xff]   ;;  %v2666_v15 = vld [vmem:[#allocation8 + $0x18] sm:$0xff]  }
 0x10d   :  { %2241 = vmatprep.subr.bf16.mxu0 %v2635_v16  ;;  %2263 = vmatprep.subr.bf16.mxu1 %v2636_v17  ;;  %v2667_v16 = vld [vmem:[#allocation8 + $0x20] sm:$0xff]   ;;  %v2668_v17 = vld [vmem:[#allocation8 + $0x28] sm:$0xff]  }
 0x110   :  { %2242 = vmatpush3.bf16.msra.mxu0 %v2637_v18  ;;  %2264 = vmatpush3.bf16.msra.mxu1 %v2638_v19  ;;  %v2669_v18 = vld [vmem:[#allocation8 + $0x30] sm:$0xff]   ;;  %v2670_v19 = vld [vmem:[#allocation8 + $0x38] sm:$0xff]  }
 0x111   :  { %2243 = vmatprep.subr.bf16.mxu0 %v2639_v20  ;;  %2265 = vmatprep.subr.bf16.mxu1 %v2640_v21 }
 0x114   :  { %2244 = vmatpush3.bf16.msra.mxu0 %v2641_v22  ;;  %2266 = vmatpush3.bf16.msra.mxu1 %v2642_v23  ;;  %v2197_v22 = vld [vmem:[%s2917_s4] ss:$0 sm:$0xff]  ;;  %s2803_s4 = smov [#allocation10]  }
 0x115   :  { %2245 = vmatprep.subr.bf16.mxu0 %v2643_v24  ;;  %2267 = vmatprep.subr.bf16.mxu1 %v2644_v25  ;;  %s1994_s30 = sshll.u32 %s2803_s4, 4  ;;  %s1995_s30 = int_to_ptr.vmem [resolvable:$true] %s1994_s30 }
 0x116   :  { %p2768_p5 = scmp.lt.s32.totalorder %s1995_s30, %s1995_s30 }
 0x118   :  { %2246 = vmatpush3.bf16.msra.mxu0 %v2645_v26  ;;  %2268 = vmatpush3.bf16.msra.mxu1 %v2646_v27 }
 0x119   :  { %2247 = vmatprep.subr.bf16.mxu0 %v2647_v28  ;;  %2269 = vmatprep.subr.bf16.mxu1 %v2648_v29 }
 0x11c   :  { %2248 = vmatpush3.bf16.msra.mxu0 %v2649_v30  ;;  %2270 = vmatpush3.bf16.msra.mxu1 %v2650_v31 }
 0x11d   :  { %2249 = vmatprep.subr.bf16.mxu0 %v2651_v32  ;;  %2271 = vmatprep.subr.bf16.mxu1 %v2652_v33 }
 0x120   :  { %2250 = vmatpush3.bf16.msra.mxu0 %v2653_v34  ;;  %2272 = vmatpush3.bf16.msra.mxu1 %v2654_v35  ;;  %v2230_v35 = vld [vmem:[%s2919_s6] ss:$0 sm:$0xff]  ;;  %s2763_s6 = scalar_lea.vmem %s1995_s30, 128 }
 0x121   :  { %2251 = vmatprep.subr.bf16.mxu0 %v2655_v36  ;;  %2273 = vmatprep.subr.bf16.mxu1 %v2656_v37  ;;  %p2764_p4 = scmp.ne.s32.totalorder %s1995_s30, %s2763_s6  ;;  %p2769_p6 = scmp.lt.s32.totalorder %s2763_s6, %s2763_s6 }
 0x123   :  { %p2770_p7 = por %p2769_p6, %p2768_p5 }
 0x124   :  { %2252 = vmatpush3.bf16.msra.mxu0 %v2657_v38  ;;  %2274 = vmatpush3.bf16.msra.mxu1 %v2658_v39 }
 0x125   :  { %2253 = vmatprep.subr.bf16.mxu0 %v2659_v40  ;;  %2275 = vmatprep.subr.bf16.mxu1 %v2660_v41  ;;  %p2771_p8 = pnand %p2770_p7, %p2764_p4 }
 0x128   :  { %2254 = vmatpush3.bf16.msra.mxu0 %v2661_v42  ;;  %2276 = vmatpush3.bf16.msra.mxu1 %v2662_v43 }
 0x129   :  { %2292 = vmatprep.subr.bf16.mxu0 %v2801_v44 }
 0x1de   :  { %v1383_v56 = vpop.f32.mrb[0].mxu0  ;;  %v1506_v57 = vpop.f32.mrb[0].mxu1 }
 0x1df   :  { %v2312_v58 = vadd.f32 %v1383_v56, %v290_v52  ;;  %v2314_v59 = vadd.f32 %v1506_v57, %v298_v53  ;;  %v1385_v60 = vpop.f32.mrb[1].mxu0  ;;  %v1508_v61 = vpop.f32.mrb[1].mxu1 }
 0x1e0   :  { %v2313_v62 = vadd.f32 %v1385_v60, %v294_v54  ;;  %v2315_v63 = vadd.f32 %v1508_v61, %v302_v55  ;;  %v1387_v0 = vpop.f32.mrb[2].mxu0  ;;  %v1510_v1 = vpop.f32.mrb[2].mxu1 }
 0x1e1   :  { %v1513_v2 = vmax.f32 %v2312_v58, 0.0  ;;  %v1515_v3 = vmax.f32 %v2314_v59, 0.0  ;;  %v1388_v4 = vpop.f32.mrb[3].mxu0  ;;  %v1511_v5 = vpop.f32.mrb[3].mxu1 }
 0x1e2   :  { %v1514_v6 = vmax.f32 %v2313_v62, 0.0  ;;  %v1516_v7 = vmax.f32 %v2315_v63, 0.0 }
 0x1e3   :  { %v1517_v11 = vpack.c.bf16 %v1513_v2, %v1513_v2  ;;  %v1519_v12 = vpack.c.bf16 %v1515_v3, %v1515_v3 }
 0x1e4   :  { %v1518_v8 = vpack.c.bf16 %v1514_v6, %v1514_v6  ;;  %v1520_v9 = vpack.c.bf16 %v1516_v7, %v1516_v7 }
 0x1e6   :  { %1816 = vmatprep.mubr.bf16.mxu0 %v1518_v8  ;;  %1856 = vmatprep.mubr.bf16.mxu1 %v1520_v9 }
 0x1e7   :  { %1817 = vmatmul.mubr.bf16.vlgmr.msra.gmra.mrb[4].mxu0 %v1517_v11  ;;  %1857 = vmatmul.mubr.bf16.vlgmr.msra.gmra.mrb[4].mxu1 %v1519_v12 }
 0x1e8   :  { %2293 = vmatpush3.bf16.msra.mxu0 %v2663_v10  ;;  %2308 = vmatprep.mubr.msk.bf16.mxu0 %vm2802_vm0, %v2801_v44 }
 0x1e9   :  { %2294 = vmatprep.subr.bf16.mxu0 %v2801_v44 }
 0x1ec   :  { %2295 = vmatpush3.bf16.msra.mxu0 %v2664_v13 }
 0x1ed   :  { %2296 = vmatprep.subr.bf16.mxu0 %v2801_v44 }
 0x1f0   :  { %2297 = vmatpush3.bf16.msra.mxu0 %v2665_v14 }
 0x1f1   :  { %2298 = vmatprep.subr.bf16.mxu0 %v2801_v44 }
 0x1f4   :  { %2299 = vmatpush3.bf16.msra.mxu0 %v2666_v15 }
 0x1f5   :  { %2300 = vmatprep.subr.bf16.mxu0 %v2801_v44 }
 0x1f8   :  { %2301 = vmatpush3.bf16.msra.mxu0 %v2667_v16 }
 0x1f9   :  { %2302 = vmatprep.subr.bf16.mxu0 %v2801_v44 }
 0x1fc   :  { %2303 = vmatpush3.bf16.msra.mxu0 %v2668_v17 }
 0x1fd   :  { %2304 = vmatprep.subr.bf16.mxu0 %v2801_v44 }
 0x200   :  { %2305 = vmatpush3.bf16.msra.mxu0 %v2669_v18 }
 0x201   :  { %2306 = vmatprep.subr.bf16.mxu0 %v2801_v44 }
 0x204   :  { %2307 = vmatpush3.bf16.msra.mxu0 %v2670_v19 }
 0x2ba   :  { %v2255_v20 = vpop.f32.mrb[4].mxu0  ;;  %v2277_v21 = vpop.f32.mrb[4].mxu1 }
 0x2bb   :  { %v2256_v23 = vpop.f32.mrb[5].mxu0  ;;  %v2278_v24 = vpop.f32.mrb[5].mxu1 }
 0x2bc   :  { %v2257_v25 = vadd.f32 %v2256_v23, %v2255_v20  ;;  %v2279_v26 = vadd.f32 %v2278_v24, %v2277_v21  ;;  %v2258_v27 = vpop.f32.mrb[6].mxu0  ;;  %v2280_v28 = vpop.f32.mrb[6].mxu1 }
 0x2bd   :  { %v2259_v29 = vpop.f32.mrb[7].mxu0  ;;  %v2281_v30 = vpop.f32.mrb[7].mxu1 }
 0x2be   :  { %v1819_v31 = vadd.f32 %v2257_v25, %v2197_v22 }
 0x2c0   :  { %v1859_v32 = vadd.f32 %v2279_v26, %v1819_v31 }
 0x2c2   :  { %v1864_v33 = vmax.f32 %v1859_v32, 0.0 }
 0x2c4   :  { %v1865_v34 = vpack.c.bf16 %v1864_v33, %v1864_v33 }
 0x2c6   :  { %2309 = vmatmul.mubr.bf16.vlgmr.msra.gmra.mrb[8].mxu0 %v1865_v34 }
 0x399   :  { %v1971_v36 = vpop.f32.mrb[8].mxu0 }
 0x39a   :  { %v1972_v37 = vadd.f32 %v2230_v35, %v1971_v36  ;;  %v2310_v38 = vpop.f32.mrb[9].mxu0 }
 0x39b   :  { %v1974_v39 = vpop.f32.mrb[10].mxu0 }
 0x39c   :  { %1977 = vmax.xlane.f32.xlu0 %v1972_v37  ;;  %v2311_v40 = vpop.f32.mrb[11].mxu0 }
 0x429   :  { %v1978_v41 = vpop.xlane.xlu0 %1977 }
 0x42a   :  { %v1979_v42 = vsub.f32 %v1972_v37, %v1978_v41 }
 0x42c   :  { %v1980_v43 = vmul.f32 1.442695, %v1979_v42 }
 0x42e   :  { %2671 = vpow2.f32 %v1980_v43 }
 0x438   :  { %v2672_v44 = vpop.eup %2671 }
 0x439   :  { %1982 = vadd.xlane.f32.xlu0 %v2672_v44 }
 0x4c6   :  { %v1983_v45 = vpop.xlane.xlu0 %1982 }
 0x4c7   :  { %2673 = vlog2.f32 %v1983_v45 }
 0x4d1   :  { %v2674_v46 = vpop.eup %2673 }
 0x4d2   :  { %v1985_v47 = vmul.f32 0.6931472, %v2674_v46 }
 0x4d4   :  { %v1986_v48 = vsub.f32 %v1979_v42, %v1985_v47 }
 0x4d6   :  { %1987 = vst [vmem:[#allocation10] sm:$0xff] %v1986_v48 }
 0x4d7   :  { %2774 = shalt.err (!%p2771_p8)
}
 0x4d8   :  { %s2775_s10 = scalar_lea.hbm %s2920_s7, 128 }
 0x4d9   :  { %p2776_p9 = scmp.ne.s32.totalorder %s2920_s7, %s2775_s10  ;;  %p2779_p10 = scmp.lt.u32.totalorder %s2775_s10, %s2920_s7 }
 0x4db   :  { %p2781_p11 = pnand %p2779_p10, %p2776_p9 }
 0x4dd   :  { %2784 = shalt.err (!%p2781_p11)
}
 0x4de   :  { %1997 = dma.vmem_to_hbm [thread:$0]  %s1995_s30, 128, %s2920_s7, [#allocation4]  }
 0x4df   :  { %2791 = dma.done.wait [#allocation4], 128  }
 0x4e0   :  { %2792 = vsyncadd [#allocation4], 4294967168 }
 0x4e1   :  { %2001 = vsyncpa [#allocation3], 1 }
 0x4e2   :  { %2002 = vsyncpa [#allocation6], 1 }
 0x4e3   :  { %2003 = vsyncpa [#allocation9], 1 }
 0x4e4   :  { %2004 = vsyncpa [#allocation4], 1 }

</bundles_post_ra>
